<compile_context>
chip_gen: v6e
topology: v6e:2x2x1
jax: 0.10.0
libtpu: 0.0.40
codegen_flags: <defaults>
</compile_context>

<pallas_src>
import functools

import jax
import jax.numpy as jnp
import numpy as np
from jax.experimental import pallas as pl
from jax.experimental.pallas import tpu as pltpu


# --------------------------------------------------------------------------- #
# Fused Pallas kernel: full SkeletonBlock forward for B_tile batch items.      #
# --------------------------------------------------------------------------- #
def _skeleton_block_kernel(*refs, cfgs, K, L, P, B, mxu_dtype):
    """refs = (x_ref, w0, b0, w1, b1, ..., y_ref, buf_a, buf_b, xstk).

    cfgs: tuple of (c_in, c_out, negative_slope_or_None) per layer (static).
    x_ref: (1, c0, B*L)  — B batch windows laid contiguously along lanes.
    w_l:   (c_out, K*c_in) stacked weights (already mxu_dtype); b_l: (c_out, 1).
    y_ref: (1, c_last, B*L) lane-dense output slab.
    buf_a/buf_b: (c_max, B*(L+2P)) f32 ping-pong activation buffers (zero
                 padding columns live here, per batch item).
    xstk:  (K*cin_max, B*L) mxu_dtype shifted-input stack for the fused matmul.
    """
    n_layers = len(cfgs)
    x_ref = refs[0]
    wb = refs[1:1 + 2 * n_layers]
    y_ref = refs[1 + 2 * n_layers]
    buf_a, buf_b, xstk = refs[2 + 2 * n_layers:]

    L_pad = L + 2 * P

    # Zero ONLY the padding columns (interior columns are fully overwritten
    # each layer; pad columns are never written).  Cheap vs a full memset and
    # safe under the "parallel" grid (no program_id==0 guard needed).
    if P > 0:
        for buf in (buf_a, buf_b):
            zcol = jnp.zeros((buf.shape[0], P), jnp.float32)
            for b in range(B):
                buf[:, b * L_pad:b * L_pad + P] = zcol
                buf[:, b * L_pad + P + L:(b + 1) * L_pad] = zcol

    # Copy this tile's inputs into the interior of buffer A (per-item windows).
    c0 = cfgs[0][0]
    for b in range(B):
        buf_a[0:c0, b * L_pad + P:b * L_pad + P + L] = (
            x_ref[0][:, b * L:(b + 1) * L].astype(jnp.float32))

    bufs = (buf_a, buf_b)
    cur = 0
    for li, (c_in, c_out, slope) in enumerate(cfgs):
        src = bufs[cur]

        # Shifted-input stack (K*c_in, B*L): columns grouped per batch item,
        # rows grouped per tap, so one MXU matmul does the whole K-tap conv.
        for k in range(K):
            for b in range(B):
                xstk[k * c_in:(k + 1) * c_in, b * L:(b + 1) * L] = (
                    src[0:c_in, b * L_pad + k:b * L_pad + k + L].astype(xstk.dtype))

        w = wb[2 * li][...]                              # (c_out, K*c_in), mxu_dtype
        bias = wb[2 * li + 1][...].astype(jnp.float32)   # (c_out, 1), f32
        rhs = xstk[0:K * c_in, :]                        # (K*c_in, B*L)

        # Single MXU matmul per layer (f32 accumulation), bias broadcast in f32.
        y = jnp.dot(w, rhs, preferred_element_type=jnp.float32) + bias
        if slope is not None:                            # fused LeakyReLU(0.2)
            y = jnp.maximum(y, y * slope)                # valid for slope in (0,1)

        if li == n_layers - 1:
            y_ref[0] = y.astype(y_ref.dtype)             # one lane-dense store
        else:
            for b in range(B):                           # keep activation in VMEM
                bufs[1 - cur][0:c_out, b * L_pad + P:b * L_pad + P + L] = (
                    y[:, b * L:(b + 1) * L])
            cur = 1 - cur


def skeleton_block_pallas(x, layers, *, b_tile=None, mxu_dtype=jnp.float32):
    """Fused SkeletonBlock forward.

    x: (N, C0, T);  layers: list of (w (C_out, C_in, K), b (C_out,), slope).
    mxu_dtype=jnp.bfloat16 enables bf16 MXU operands (f32 accumulate) on
    v6e/v7x; default f32 matches the reference within tight tolerance.
    """
    N, c0, L = x.shape
    K = layers[0][0].shape[2]
    assert K % 2 == 1, "'same' padding (P=(K-1)//2) requires an odd kernel_size"
    P = (K - 1) // 2
    L_pad = L + 2 * P

    cfgs = []
    wb_inputs = []
    prev_out = c0
    for w, b, slope in layers:
        c_out, c_in, k_l = w.shape
        assert k_l == K
        # Needed so skipping the full-buffer memset stays correct (only rows
        # written by the previous layer are ever read).
        assert c_in == prev_out, "layer channel chain must be contiguous"
        prev_out = c_out
        # (C_out, C_in, K) -> (C_out, K*C_in) with column index = k*C_in + i,
        # pre-cast once to the MXU operand dtype.
        w_stk = jnp.transpose(w, (0, 2, 1)).reshape(c_out, K * c_in).astype(mxu_dtype)
        wb_inputs += [w_stk, b.reshape(c_out, 1).astype(jnp.float32)]
        cfgs.append((c_in, c_out, slope))

    c_last = cfgs[-1][1]
    c_max = max(max(ci, co) for ci, co, _ in cfgs)
    cin_max = max(ci for ci, _, _ in cfgs)

    # ---- batch folding: pick B_tile so each matmul has >=~256 lanes --------
    if b_tile is None:
        b_tile = max(1, min(N, pl.cdiv(256, L)))
        # Prefer a grid of length >=2 (both TensorCores on v7x) if that still
        # leaves >=128 lanes per step.
        if pl.cdiv(N, b_tile) < 2 and b_tile > 1 and (b_tile // 2) * L >= 128:
            b_tile = b_tile // 2
    b_tile = int(b_tile)

    NT = pl.cdiv(N, b_tile)
    N_pad = NT * b_tile
    if N_pad > N:
        x = jnp.concatenate([x, jnp.zeros((N_pad - N, c0, L), x.dtype)], axis=0)
    # (N_pad, c0, L) -> (NT, c0, b_tile*L): B_tile time windows along lanes.
    x_folded = (x.reshape(NT, b_tile, c0, L)
                 .transpose(0, 2, 1, 3)
                 .reshape(NT, c0, b_tile * L))

    kernel = functools.partial(_skeleton_block_kernel, cfgs=tuple(cfgs),
                               K=K, L=L, P=P, B=b_tile, mxu_dtype=mxu_dtype)

    in_specs = [pl.BlockSpec((1, c0, b_tile * L), lambda n: (n, 0, 0))]
    # Weights / biases: full blocks, constant index map -> resident across steps.
    for arr in wb_inputs:
        in_specs.append(pl.BlockSpec(arr.shape, lambda n: (0, 0)))

    mxu_bytes = jnp.dtype(mxu_dtype).itemsize
    scratch_bytes = (2 * c_max * b_tile * L_pad * 4
                     + K * cin_max * b_tile * L * mxu_bytes)
    io_bytes = (c0 + c_last) * b_tile * L * x.dtype.itemsize
    w_bytes = sum(int(np.prod(a.shape)) * a.dtype.itemsize for a in wb_inputs)
    vmem_needed = scratch_bytes + 2 * io_bytes + 2 * w_bytes
    cp_kwargs = dict(dimension_semantics=("parallel",))
    if vmem_needed > (8 << 20):   # only raise the scoped limit when required
        cp_kwargs["vmem_limit_bytes"] = min(120 << 20,
                                            int(vmem_needed * 3 // 2) + (4 << 20))

    out = pl.pallas_call(
        kernel,
        out_shape=jax.ShapeDtypeStruct((NT, c_last, b_tile * L), x.dtype),
        grid=(NT,),
        in_specs=in_specs,
        out_specs=pl.BlockSpec((1, c_last, b_tile * L), lambda n: (n, 0, 0)),
        scratch_shapes=[
            pltpu.VMEM((c_max, b_tile * L_pad), jnp.float32),     # activation ping
            pltpu.VMEM((c_max, b_tile * L_pad), jnp.float32),     # activation pong
            pltpu.VMEM((K * cin_max, b_tile * L), mxu_dtype),     # shifted stack
        ],
        compiler_params=pltpu.CompilerParams(**cp_kwargs),
    )(x_folded, *wb_inputs)

    # Unfold the lane-dense slab back to (N, c_last, L) and drop batch padding.
    out = (out.reshape(NT, c_last, b_tile, L)
              .transpose(0, 2, 1, 3)
              .reshape(N_pad, c_last, L))
    return out[:N]


# --------------------------------------------------------------------------- #
# SkeletonBlock parameter construction (deterministic, synthetic)             #
# --------------------------------------------------------------------------- #
def _skeleton_mask(neighbors, c_in, c_out):
    J = len(neighbors)
    cin_pj, cout_pj = c_in // J, c_out // J
    m = np.zeros((c_out, c_in), np.float32)
    for j, nbrs in enumerate(neighbors):
        for nb in nbrs:
            m[j * cout_pj:(j + 1) * cout_pj, nb * cin_pj:(nb + 1) * cin_pj] = 1.0
    return jnp.asarray(m)


def build_skeleton_block_params(key, neighbors, channels, kernel_size):
    """Returns list of (w, b, negative_slope_or_None) per layer, mimicking
    SkeletonBlock.__init__: skeleton-conv + lrelu blocks, then a prediction
    layer (plain conv1d iff channels[-1]==1) with no activation."""
    layers = []
    specs = list(zip(channels[:-2], channels[1:-1]))           # hidden blocks
    specs.append((channels[-2], channels[-1]))                 # pred block
    for idx, (cin, cout) in enumerate(specs):
        key, kw, kb = jax.random.split(key, 3)
        w = jax.random.normal(kw, (cout, cin, kernel_size), jnp.float32) * 0.1
        b = jax.random.normal(kb, (cout,), jnp.float32) * 0.01
        is_pred = idx == len(specs) - 1
        use_skeleton = not (is_pred and channels[-1] == 1)
        if use_skeleton:
            w = w * _skeleton_mask(neighbors, cin, cout)[:, :, None]
        slope = None if is_pred else 0.2                       # lrelu(0.2)
        layers.append((w, b, slope))
    return layers


# --------------------------------------------------------------------------- #
# Pure-JAX reference for verification                                         #
# --------------------------------------------------------------------------- #
def _ref_conv1d(x, w, b, negative_slope=None):
    N, C_in, L = x.shape
    C_out, _, K = w.shape
    P = (K - 1) // 2
    xp = jnp.pad(x, ((0, 0), (0, 0), (P, P)))
    y = jnp.zeros((N, C_out, L), jnp.float32)
    for k in range(K):
        y = y + jnp.einsum("oi,nil->nol", w[:, :, k], xp[:, :, k:k + L])
    y = y + b[None, :, None]
    if negative_slope is not None:
        y = jnp.where(y >= 0, y, y * negative_slope)
    return y


def _ref_forward(x, layers):
    for w, b, slope in layers:
        x = _ref_conv1d(x, w, b, negative_slope=slope)
    return x


# --------------------------------------------------------------------------- #
if __name__ == "__main__":
    # 4 joints, 2 input channels / joint, a short temporal window.
    neighbors = [[0, 1], [0, 1, 2], [1, 2, 3], [2, 3]]
    channels = [8, 16, 16, 8]          # -> 2 skeleton+lrelu blocks, 1 pred block
    kernel_size = 3                    # 'same' padding requires odd K
    N, T = 2, 16

    key = jax.random.PRNGKey(0)
    kx, kp = jax.random.split(key)
    x = jax.random.normal(kx, (N, channels[0], T), jnp.float32)

    layers = build_skeleton_block_params(kp, neighbors, channels, kernel_size)

    out = skeleton_block_pallas(x, layers)
    out = jax.block_until_ready(out)

    ref = _ref_forward(x, layers)
    assert out.shape == (N, channels[-1], T)
    np.testing.assert_allclose(np.asarray(out), np.asarray(ref),
                               rtol=1e-4, atol=1e-4)

    print("KERNEL_OK")
</pallas_src>

<mosaic_0001>
module attributes {stable_mosaic.version = 11 : i64} {
  func.func @_skeleton_block_kernel(%arg0: i32, %arg1: memref<1x8x32xf32, #tpu.memory_space<vmem>>, %arg2: memref<16x24xf32, #tpu.memory_space<vmem>>, %arg3: memref<16x1xf32, #tpu.memory_space<vmem>>, %arg4: memref<16x48xf32, #tpu.memory_space<vmem>>, %arg5: memref<16x1xf32, #tpu.memory_space<vmem>>, %arg6: memref<8x48xf32, #tpu.memory_space<vmem>>, %arg7: memref<8x1xf32, #tpu.memory_space<vmem>>, %arg8: memref<1x8x32xf32, #tpu.memory_space<vmem>>, %arg9: memref<16x36xf32, #tpu.memory_space<vmem>>, %arg10: memref<16x36xf32, #tpu.memory_space<vmem>>, %arg11: memref<48x32xf32, #tpu.memory_space<vmem>>) attributes {dimension_semantics = [#tpu.dimension_semantics<parallel>], iteration_bounds = array<i64: 1>, scalar_prefetch = 0 : i64, scratch_operands = 3 : i64, tpu.core_type = #tpu.core_type<tc>, window_params = [{transform_indices = @transform_0, window_bounds = array<i64: 1, 8, 32>}, {pipeline_mode = #tpu.pipeline_mode<synchronous>, transform_indices = @transform_1, window_bounds = array<i64: 16, 24>}, {pipeline_mode = #tpu.pipeline_mode<synchronous>, transform_indices = @transform_2, window_bounds = array<i64: 16, 1>}, {pipeline_mode = #tpu.pipeline_mode<synchronous>, transform_indices = @transform_3, window_bounds = array<i64: 16, 48>}, {pipeline_mode = #tpu.pipeline_mode<synchronous>, transform_indices = @transform_4, window_bounds = array<i64: 16, 1>}, {pipeline_mode = #tpu.pipeline_mode<synchronous>, transform_indices = @transform_5, window_bounds = array<i64: 8, 48>}, {pipeline_mode = #tpu.pipeline_mode<synchronous>, transform_indices = @transform_6, window_bounds = array<i64: 8, 1>}, {transform_indices = @transform_7, window_bounds = array<i64: 1, 8, 32>}]} {
    %cst = arith.constant 0.000000e+00 : f32
    %0 = vector.broadcast %cst : f32 to vector<16x1xf32>
    %c0 = arith.constant 0 : index
    %c0_0 = arith.constant 0 : index
    %1 = vector.load %arg9[%c0, %c0_0] : memref<16x36xf32, #tpu.memory_space<vmem>>, vector<16x1xf32>
    tpu.vector_store %arg9[%c0, %c0_0], %0 {strides = array<i32>} : memref<16x36xf32, #tpu.memory_space<vmem>>, vector<16x1xf32>,
    %c0_1 = arith.constant 0 : index
    %c17 = arith.constant 17 : index
    %2 = vector.load %arg9[%c0_1, %c17] : memref<16x36xf32, #tpu.memory_space<vmem>>, vector<16x1xf32>
    tpu.vector_store %arg9[%c0_1, %c17], %0 {strides = array<i32>} : memref<16x36xf32, #tpu.memory_space<vmem>>, vector<16x1xf32>,
    %c0_2 = arith.constant 0 : index
    %c18 = arith.constant 18 : index
    %3 = vector.load %arg9[%c0_2, %c18] : memref<16x36xf32, #tpu.memory_space<vmem>>, vector<16x1xf32>
    tpu.vector_store %arg9[%c0_2, %c18], %0 {strides = array<i32>} : memref<16x36xf32, #tpu.memory_space<vmem>>, vector<16x1xf32>,
    %c0_3 = arith.constant 0 : index
    %c35 = arith.constant 35 : index
    %4 = vector.load %arg9[%c0_3, %c35] : memref<16x36xf32, #tpu.memory_space<vmem>>, vector<16x1xf32>
    tpu.vector_store %arg9[%c0_3, %c35], %0 {strides = array<i32>} : memref<16x36xf32, #tpu.memory_space<vmem>>, vector<16x1xf32>,
    %cst_4 = arith.constant 0.000000e+00 : f32
    %5 = vector.broadcast %cst_4 : f32 to vector<16x1xf32>
    %c0_5 = arith.constant 0 : index
    %c0_6 = arith.constant 0 : index
    %6 = vector.load %arg10[%c0_5, %c0_6] : memref<16x36xf32, #tpu.memory_space<vmem>>, vector<16x1xf32>
    tpu.vector_store %arg10[%c0_5, %c0_6], %5 {strides = array<i32>} : memref<16x36xf32, #tpu.memory_space<vmem>>, vector<16x1xf32>,
    %c0_7 = arith.constant 0 : index
    %c17_8 = arith.constant 17 : index
    %7 = vector.load %arg10[%c0_7, %c17_8] : memref<16x36xf32, #tpu.memory_space<vmem>>, vector<16x1xf32>
    tpu.vector_store %arg10[%c0_7, %c17_8], %5 {strides = array<i32>} : memref<16x36xf32, #tpu.memory_space<vmem>>, vector<16x1xf32>,
    %c0_9 = arith.constant 0 : index
    %c18_10 = arith.constant 18 : index
    %8 = vector.load %arg10[%c0_9, %c18_10] : memref<16x36xf32, #tpu.memory_space<vmem>>, vector<16x1xf32>
    tpu.vector_store %arg10[%c0_9, %c18_10], %5 {strides = array<i32>} : memref<16x36xf32, #tpu.memory_space<vmem>>, vector<16x1xf32>,
    %c0_11 = arith.constant 0 : index
    %c35_12 = arith.constant 35 : index
    %9 = vector.load %arg10[%c0_11, %c35_12] : memref<16x36xf32, #tpu.memory_space<vmem>>, vector<16x1xf32>
    tpu.vector_store %arg10[%c0_11, %c35_12], %5 {strides = array<i32>} : memref<16x36xf32, #tpu.memory_space<vmem>>, vector<16x1xf32>,
    %c0_13 = arith.constant 0 : index
    %c0_14 = arith.constant 0 : index
    %c0_15 = arith.constant 0 : index
    %10 = vector.load %arg1[%c0_13, %c0_14, %c0_15] : memref<1x8x32xf32, #tpu.memory_space<vmem>>, vector<1x8x32xf32>
    %11 = vector.shape_cast %10 : vector<1x8x32xf32> to vector<8x32xf32>
    %12 = vector.extract_strided_slice %11 {offsets = [0, 0], sizes = [8, 16], strides = [1, 1]} : vector<8x32xf32> to vector<8x16xf32>
    %c0_16 = arith.constant 0 : index
    %c1 = arith.constant 1 : index
    %13 = vector.load %arg9[%c0_16, %c1] : memref<16x36xf32, #tpu.memory_space<vmem>>, vector<8x16xf32>
    tpu.vector_store %arg9[%c0_16, %c1], %12 {strides = array<i32>} : memref<16x36xf32, #tpu.memory_space<vmem>>, vector<8x16xf32>,
    %c0_17 = arith.constant 0 : index
    %c0_18 = arith.constant 0 : index
    %c0_19 = arith.constant 0 : index
    %14 = vector.load %arg1[%c0_17, %c0_18, %c0_19] : memref<1x8x32xf32, #tpu.memory_space<vmem>>, vector<1x8x32xf32>
    %15 = vector.shape_cast %14 : vector<1x8x32xf32> to vector<8x32xf32>
    %16 = vector.extract_strided_slice %15 {offsets = [0, 16], sizes = [8, 16], strides = [1, 1]} : vector<8x32xf32> to vector<8x16xf32>
    %c0_20 = arith.constant 0 : index
    %c19 = arith.constant 19 : index
    %17 = vector.load %arg9[%c0_20, %c19] : memref<16x36xf32, #tpu.memory_space<vmem>>, vector<8x16xf32>
    tpu.vector_store %arg9[%c0_20, %c19], %16 {strides = array<i32>} : memref<16x36xf32, #tpu.memory_space<vmem>>, vector<8x16xf32>,
    %c0_21 = arith.constant 0 : index
    %c0_22 = arith.constant 0 : index
    %18 = vector.load %arg9[%c0_21, %c0_22] : memref<16x36xf32, #tpu.memory_space<vmem>>, vector<8x16xf32>
    %c0_23 = arith.constant 0 : index
    %c0_24 = arith.constant 0 : index
    %19 = vector.load %arg11[%c0_23, %c0_24] : memref<48x32xf32, #tpu.memory_space<vmem>>, vector<8x16xf32>
    tpu.vector_store %arg11[%c0_23, %c0_24], %18 {strides = array<i32>} : memref<48x32xf32, #tpu.memory_space<vmem>>, vector<8x16xf32>,
    %c0_25 = arith.constant 0 : index
    %c18_26 = arith.constant 18 : index
    %20 = vector.load %arg9[%c0_25, %c18_26] : memref<16x36xf32, #tpu.memory_space<vmem>>, vector<8x16xf32>
    %c0_27 = arith.constant 0 : index
    %c16 = arith.constant 16 : index
    %21 = vector.load %arg11[%c0_27, %c16] : memref<48x32xf32, #tpu.memory_space<vmem>>, vector<8x16xf32>
    tpu.vector_store %arg11[%c0_27, %c16], %20 {strides = array<i32>} : memref<48x32xf32, #tpu.memory_space<vmem>>, vector<8x16xf32>,
    %c0_28 = arith.constant 0 : index
    %c1_29 = arith.constant 1 : index
    %22 = vector.load %arg9[%c0_28, %c1_29] : memref<16x36xf32, #tpu.memory_space<vmem>>, vector<8x16xf32>
    %c8 = arith.constant 8 : index
    %c0_30 = arith.constant 0 : index
    %23 = vector.load %arg11[%c8, %c0_30] : memref<48x32xf32, #tpu.memory_space<vmem>>, vector<8x16xf32>
    tpu.vector_store %arg11[%c8, %c0_30], %22 {strides = array<i32>} : memref<48x32xf32, #tpu.memory_space<vmem>>, vector<8x16xf32>,
    %c0_31 = arith.constant 0 : index
    %c19_32 = arith.constant 19 : index
    %24 = vector.load %arg9[%c0_31, %c19_32] : memref<16x36xf32, #tpu.memory_space<vmem>>, vector<8x16xf32>
    %c8_33 = arith.constant 8 : index
    %c16_34 = arith.constant 16 : index
    %25 = vector.load %arg11[%c8_33, %c16_34] : memref<48x32xf32, #tpu.memory_space<vmem>>, vector<8x16xf32>
    tpu.vector_store %arg11[%c8_33, %c16_34], %24 {strides = array<i32>} : memref<48x32xf32, #tpu.memory_space<vmem>>, vector<8x16xf32>,
    %c0_35 = arith.constant 0 : index
    %c2 = arith.constant 2 : index
    %26 = vector.load %arg9[%c0_35, %c2] : memref<16x36xf32, #tpu.memory_space<vmem>>, vector<8x16xf32>
    %c16_36 = arith.constant 16 : index
    %c0_37 = arith.constant 0 : index
    %27 = vector.load %arg11[%c16_36, %c0_37] : memref<48x32xf32, #tpu.memory_space<vmem>>, vector<8x16xf32>
    tpu.vector_store %arg11[%c16_36, %c0_37], %26 {strides = array<i32>} : memref<48x32xf32, #tpu.memory_space<vmem>>, vector<8x16xf32>,
    %c0_38 = arith.constant 0 : index
    %c20 = arith.constant 20 : index
    %28 = vector.load %arg9[%c0_38, %c20] : memref<16x36xf32, #tpu.memory_space<vmem>>, vector<8x16xf32>
    %c16_39 = arith.constant 16 : index
    %c16_40 = arith.constant 16 : index
    %29 = vector.load %arg11[%c16_39, %c16_40] : memref<48x32xf32, #tpu.memory_space<vmem>>, vector<8x16xf32>
    tpu.vector_store %arg11[%c16_39, %c16_40], %28 {strides = array<i32>} : memref<48x32xf32, #tpu.memory_space<vmem>>, vector<8x16xf32>,
    %c0_41 = arith.constant 0 : index
    %c0_42 = arith.constant 0 : index
    %30 = vector.load %arg2[%c0_41, %c0_42] : memref<16x24xf32, #tpu.memory_space<vmem>>, vector<16x24xf32>
    %c0_43 = arith.constant 0 : index
    %c0_44 = arith.constant 0 : index
    %31 = vector.load %arg3[%c0_43, %c0_44] : memref<16x1xf32, #tpu.memory_space<vmem>>, vector<16x1xf32>
    %c0_45 = arith.constant 0 : index
    %c0_46 = arith.constant 0 : index
    %32 = vector.load %arg11[%c0_45, %c0_46] : memref<48x32xf32, #tpu.memory_space<vmem>>, vector<24x32xf32>
    %cst_47 = arith.constant dense<0.000000e+00> : vector<16x32xf32>
    %33 = tpu.matmul %30, %32, %cst_47 {dimension_numbers = #tpu.dot_dimension_numbers<[1], [0], [0], [1], [0, 0, 1, 1], [], []>} : vector<16x24xf32>, vector<24x32xf32>, vector<16x32xf32> -> vector<16x32xf32>
    %34 = vector.broadcast %31 : vector<16x1xf32> to vector<16x32xf32>
    %35 = arith.addf %33, %34 : vector<16x32xf32>
    %cst_48 = arith.constant 2.000000e-01 : f32
    %36 = vector.broadcast %cst_48 : f32 to vector<16x32xf32>
    %37 = arith.mulf %35, %36 : vector<16x32xf32>
    %38 = arith.maximumf %35, %37 : vector<16x32xf32>
    %39 = vector.extract_strided_slice %38 {offsets = [0, 0], sizes = [16, 16], strides = [1, 1]} : vector<16x32xf32> to vector<16x16xf32>
    %c0_49 = arith.constant 0 : index
    %c1_50 = arith.constant 1 : index
    %40 = vector.load %arg10[%c0_49, %c1_50] : memref<16x36xf32, #tpu.memory_space<vmem>>, vector<16x16xf32>
    tpu.vector_store %arg10[%c0_49, %c1_50], %39 {strides = array<i32>} : memref<16x36xf32, #tpu.memory_space<vmem>>, vector<16x16xf32>,
    %41 = vector.extract_strided_slice %38 {offsets = [0, 16], sizes = [16, 16], strides = [1, 1]} : vector<16x32xf32> to vector<16x16xf32>
    %c0_51 = arith.constant 0 : index
    %c19_52 = arith.constant 19 : index
    %42 = vector.load %arg10[%c0_51, %c19_52] : memref<16x36xf32, #tpu.memory_space<vmem>>, vector<16x16xf32>
    tpu.vector_store %arg10[%c0_51, %c19_52], %41 {strides = array<i32>} : memref<16x36xf32, #tpu.memory_space<vmem>>, vector<16x16xf32>,
    %c0_53 = arith.constant 0 : index
    %c0_54 = arith.constant 0 : index
    %43 = vector.load %arg10[%c0_53, %c0_54] : memref<16x36xf32, #tpu.memory_space<vmem>>, vector<16x16xf32>
    %c0_55 = arith.constant 0 : index
    %c0_56 = arith.constant 0 : index
    %44 = vector.load %arg11[%c0_55, %c0_56] : memref<48x32xf32, #tpu.memory_space<vmem>>, vector<16x16xf32>
    tpu.vector_store %arg11[%c0_55, %c0_56], %43 {strides = array<i32>} : memref<48x32xf32, #tpu.memory_space<vmem>>, vector<16x16xf32>,
    %c0_57 = arith.constant 0 : index
    %c18_58 = arith.constant 18 : index
    %45 = vector.load %arg10[%c0_57, %c18_58] : memref<16x36xf32, #tpu.memory_space<vmem>>, vector<16x16xf32>
    %c0_59 = arith.constant 0 : index
    %c16_60 = arith.constant 16 : index
    %46 = vector.load %arg11[%c0_59, %c16_60] : memref<48x32xf32, #tpu.memory_space<vmem>>, vector<16x16xf32>
    tpu.vector_store %arg11[%c0_59, %c16_60], %45 {strides = array<i32>} : memref<48x32xf32, #tpu.memory_space<vmem>>, vector<16x16xf32>,
    %c0_61 = arith.constant 0 : index
    %c1_62 = arith.constant 1 : index
    %47 = vector.load %arg10[%c0_61, %c1_62] : memref<16x36xf32, #tpu.memory_space<vmem>>, vector<16x16xf32>
    %c16_63 = arith.constant 16 : index
    %c0_64 = arith.constant 0 : index
    %48 = vector.load %arg11[%c16_63, %c0_64] : memref<48x32xf32, #tpu.memory_space<vmem>>, vector<16x16xf32>
    tpu.vector_store %arg11[%c16_63, %c0_64], %47 {strides = array<i32>} : memref<48x32xf32, #tpu.memory_space<vmem>>, vector<16x16xf32>,
    %c0_65 = arith.constant 0 : index
    %c19_66 = arith.constant 19 : index
    %49 = vector.load %arg10[%c0_65, %c19_66] : memref<16x36xf32, #tpu.memory_space<vmem>>, vector<16x16xf32>
    %c16_67 = arith.constant 16 : index
    %c16_68 = arith.constant 16 : index
    %50 = vector.load %arg11[%c16_67, %c16_68] : memref<48x32xf32, #tpu.memory_space<vmem>>, vector<16x16xf32>
    tpu.vector_store %arg11[%c16_67, %c16_68], %49 {strides = array<i32>} : memref<48x32xf32, #tpu.memory_space<vmem>>, vector<16x16xf32>,
    %c0_69 = arith.constant 0 : index
    %c2_70 = arith.constant 2 : index
    %51 = vector.load %arg10[%c0_69, %c2_70] : memref<16x36xf32, #tpu.memory_space<vmem>>, vector<16x16xf32>
    %c32 = arith.constant 32 : index
    %c0_71 = arith.constant 0 : index
    %52 = vector.load %arg11[%c32, %c0_71] : memref<48x32xf32, #tpu.memory_space<vmem>>, vector<16x16xf32>
    tpu.vector_store %arg11[%c32, %c0_71], %51 {strides = array<i32>} : memref<48x32xf32, #tpu.memory_space<vmem>>, vector<16x16xf32>,
    %c0_72 = arith.constant 0 : index
    %c20_73 = arith.constant 20 : index
    %53 = vector.load %arg10[%c0_72, %c20_73] : memref<16x36xf32, #tpu.memory_space<vmem>>, vector<16x16xf32>
    %c32_74 = arith.constant 32 : index
    %c16_75 = arith.constant 16 : index
    %54 = vector.load %arg11[%c32_74, %c16_75] : memref<48x32xf32, #tpu.memory_space<vmem>>, vector<16x16xf32>
    tpu.vector_store %arg11[%c32_74, %c16_75], %53 {strides = array<i32>} : memref<48x32xf32, #tpu.memory_space<vmem>>, vector<16x16xf32>,
    %c0_76 = arith.constant 0 : index
    %c0_77 = arith.constant 0 : index
    %55 = vector.load %arg4[%c0_76, %c0_77] : memref<16x48xf32, #tpu.memory_space<vmem>>, vector<16x48xf32>
    %c0_78 = arith.constant 0 : index
    %c0_79 = arith.constant 0 : index
    %56 = vector.load %arg5[%c0_78, %c0_79] : memref<16x1xf32, #tpu.memory_space<vmem>>, vector<16x1xf32>
    %c0_80 = arith.constant 0 : index
    %c0_81 = arith.constant 0 : index
    %57 = vector.load %arg11[%c0_80, %c0_81] : memref<48x32xf32, #tpu.memory_space<vmem>>, vector<48x32xf32>
    %cst_82 = arith.constant dense<0.000000e+00> : vector<16x32xf32>
    %58 = tpu.matmul %55, %57, %cst_82 {dimension_numbers = #tpu.dot_dimension_numbers<[1], [0], [0], [1], [0, 0, 1, 1], [], []>} : vector<16x48xf32>, vector<48x32xf32>, vector<16x32xf32> -> vector<16x32xf32>
    %59 = vector.broadcast %56 : vector<16x1xf32> to vector<16x32xf32>
    %60 = arith.addf %58, %59 : vector<16x32xf32>
    %cst_83 = arith.constant 2.000000e-01 : f32
    %61 = vector.broadcast %cst_83 : f32 to vector<16x32xf32>
    %62 = arith.mulf %60, %61 : vector<16x32xf32>
    %63 = arith.maximumf %60, %62 : vector<16x32xf32>
    %64 = vector.extract_strided_slice %63 {offsets = [0, 0], sizes = [16, 16], strides = [1, 1]} : vector<16x32xf32> to vector<16x16xf32>
    %c0_84 = arith.constant 0 : index
    %c1_85 = arith.constant 1 : index
    %65 = vector.load %arg9[%c0_84, %c1_85] : memref<16x36xf32, #tpu.memory_space<vmem>>, vector<16x16xf32>
    tpu.vector_store %arg9[%c0_84, %c1_85], %64 {strides = array<i32>} : memref<16x36xf32, #tpu.memory_space<vmem>>, vector<16x16xf32>,
    %66 = vector.extract_strided_slice %63 {offsets = [0, 16], sizes = [16, 16], strides = [1, 1]} : vector<16x32xf32> to vector<16x16xf32>
    %c0_86 = arith.constant 0 : index
    %c19_87 = arith.constant 19 : index
    %67 = vector.load %arg9[%c0_86, %c19_87] : memref<16x36xf32, #tpu.memory_space<vmem>>, vector<16x16xf32>
    tpu.vector_store %arg9[%c0_86, %c19_87], %66 {strides = array<i32>} : memref<16x36xf32, #tpu.memory_space<vmem>>, vector<16x16xf32>,
    %c0_88 = arith.constant 0 : index
    %c0_89 = arith.constant 0 : index
    %68 = vector.load %arg9[%c0_88, %c0_89] : memref<16x36xf32, #tpu.memory_space<vmem>>, vector<16x16xf32>
    %c0_90 = arith.constant 0 : index
    %c0_91 = arith.constant 0 : index
    %69 = vector.load %arg11[%c0_90, %c0_91] : memref<48x32xf32, #tpu.memory_space<vmem>>, vector<16x16xf32>
    tpu.vector_store %arg11[%c0_90, %c0_91], %68 {strides = array<i32>} : memref<48x32xf32, #tpu.memory_space<vmem>>, vector<16x16xf32>,
    %c0_92 = arith.constant 0 : index
    %c18_93 = arith.constant 18 : index
    %70 = vector.load %arg9[%c0_92, %c18_93] : memref<16x36xf32, #tpu.memory_space<vmem>>, vector<16x16xf32>
    %c0_94 = arith.constant 0 : index
    %c16_95 = arith.constant 16 : index
    %71 = vector.load %arg11[%c0_94, %c16_95] : memref<48x32xf32, #tpu.memory_space<vmem>>, vector<16x16xf32>
    tpu.vector_store %arg11[%c0_94, %c16_95], %70 {strides = array<i32>} : memref<48x32xf32, #tpu.memory_space<vmem>>, vector<16x16xf32>,
    %c0_96 = arith.constant 0 : index
    %c1_97 = arith.constant 1 : index
    %72 = vector.load %arg9[%c0_96, %c1_97] : memref<16x36xf32, #tpu.memory_space<vmem>>, vector<16x16xf32>
    %c16_98 = arith.constant 16 : index
    %c0_99 = arith.constant 0 : index
    %73 = vector.load %arg11[%c16_98, %c0_99] : memref<48x32xf32, #tpu.memory_space<vmem>>, vector<16x16xf32>
    tpu.vector_store %arg11[%c16_98, %c0_99], %72 {strides = array<i32>} : memref<48x32xf32, #tpu.memory_space<vmem>>, vector<16x16xf32>,
    %c0_100 = arith.constant 0 : index
    %c19_101 = arith.constant 19 : index
    %74 = vector.load %arg9[%c0_100, %c19_101] : memref<16x36xf32, #tpu.memory_space<vmem>>, vector<16x16xf32>
    %c16_102 = arith.constant 16 : index
    %c16_103 = arith.constant 16 : index
    %75 = vector.load %arg11[%c16_102, %c16_103] : memref<48x32xf32, #tpu.memory_space<vmem>>, vector<16x16xf32>
    tpu.vector_store %arg11[%c16_102, %c16_103], %74 {strides = array<i32>} : memref<48x32xf32, #tpu.memory_space<vmem>>, vector<16x16xf32>,
    %c0_104 = arith.constant 0 : index
    %c2_105 = arith.constant 2 : index
    %76 = vector.load %arg9[%c0_104, %c2_105] : memref<16x36xf32, #tpu.memory_space<vmem>>, vector<16x16xf32>
    %c32_106 = arith.constant 32 : index
    %c0_107 = arith.constant 0 : index
    %77 = vector.load %arg11[%c32_106, %c0_107] : memref<48x32xf32, #tpu.memory_space<vmem>>, vector<16x16xf32>
    tpu.vector_store %arg11[%c32_106, %c0_107], %76 {strides = array<i32>} : memref<48x32xf32, #tpu.memory_space<vmem>>, vector<16x16xf32>,
    %c0_108 = arith.constant 0 : index
    %c20_109 = arith.constant 20 : index
    %78 = vector.load %arg9[%c0_108, %c20_109] : memref<16x36xf32, #tpu.memory_space<vmem>>, vector<16x16xf32>
    %c32_110 = arith.constant 32 : index
    %c16_111 = arith.constant 16 : index
    %79 = vector.load %arg11[%c32_110, %c16_111] : memref<48x32xf32, #tpu.memory_space<vmem>>, vector<16x16xf32>
    tpu.vector_store %arg11[%c32_110, %c16_111], %78 {strides = array<i32>} : memref<48x32xf32, #tpu.memory_space<vmem>>, vector<16x16xf32>,
    %c0_112 = arith.constant 0 : index
    %c0_113 = arith.constant 0 : index
    %80 = vector.load %arg6[%c0_112, %c0_113] : memref<8x48xf32, #tpu.memory_space<vmem>>, vector<8x48xf32>
    %c0_114 = arith.constant 0 : index
    %c0_115 = arith.constant 0 : index
    %81 = vector.load %arg7[%c0_114, %c0_115] : memref<8x1xf32, #tpu.memory_space<vmem>>, vector<8x1xf32>
    %c0_116 = arith.constant 0 : index
    %c0_117 = arith.constant 0 : index
    %82 = vector.load %arg11[%c0_116, %c0_117] : memref<48x32xf32, #tpu.memory_space<vmem>>, vector<48x32xf32>
    %cst_118 = arith.constant dense<0.000000e+00> : vector<8x32xf32>
    %83 = tpu.matmul %80, %82, %cst_118 {dimension_numbers = #tpu.dot_dimension_numbers<[1], [0], [0], [1], [0, 0, 1, 1], [], []>} : vector<8x48xf32>, vector<48x32xf32>, vector<8x32xf32> -> vector<8x32xf32>
    %84 = vector.broadcast %81 : vector<8x1xf32> to vector<8x32xf32>
    %85 = arith.addf %83, %84 : vector<8x32xf32>
    %c0_119 = arith.constant 0 : index
    %c0_120 = arith.constant 0 : index
    %c0_121 = arith.constant 0 : index
    %86 = vector.load %arg8[%c0_119, %c0_120, %c0_121] : memref<1x8x32xf32, #tpu.memory_space<vmem>>, vector<1x8x32xf32>
    %87 = vector.shape_cast %86 : vector<1x8x32xf32> to vector<8x32xf32>
    %88 = vector.shape_cast %85 : vector<8x32xf32> to vector<1x8x32xf32>
    tpu.vector_store %arg8[%c0_119, %c0_120, %c0_121], %88 {strides = array<i32>} : memref<1x8x32xf32, #tpu.memory_space<vmem>>, vector<1x8x32xf32>,
    return
  }
  func.func @transform_0(%arg0: i32) -> (i32, i32, i32) {
    %c0_i32 = arith.constant 0 : i32
    %c0_i32_0 = arith.constant 0 : i32
    %c0_i32_1 = arith.constant 0 : i32
    return %arg0, %c0_i32, %c0_i32_0 : i32, i32, i32
  }
  func.func @transform_1(%arg0: i32) -> (i32, i32) {
    %c0_i32 = arith.constant 0 : i32
    %c0_i32_0 = arith.constant 0 : i32
    %c0_i32_1 = arith.constant 0 : i32
    return %c0_i32, %c0_i32_0 : i32, i32
  }
  func.func @transform_2(%arg0: i32) -> (i32, i32) {
    %c0_i32 = arith.constant 0 : i32
    %c0_i32_0 = arith.constant 0 : i32
    %c0_i32_1 = arith.constant 0 : i32
    return %c0_i32, %c0_i32_0 : i32, i32
  }
  func.func @transform_3(%arg0: i32) -> (i32, i32) {
    %c0_i32 = arith.constant 0 : i32
    %c0_i32_0 = arith.constant 0 : i32
    %c0_i32_1 = arith.constant 0 : i32
    return %c0_i32, %c0_i32_0 : i32, i32
  }
  func.func @transform_4(%arg0: i32) -> (i32, i32) {
    %c0_i32 = arith.constant 0 : i32
    %c0_i32_0 = arith.constant 0 : i32
    %c0_i32_1 = arith.constant 0 : i32
    return %c0_i32, %c0_i32_0 : i32, i32
  }
  func.func @transform_5(%arg0: i32) -> (i32, i32) {
    %c0_i32 = arith.constant 0 : i32
    %c0_i32_0 = arith.constant 0 : i32
    %c0_i32_1 = arith.constant 0 : i32
    return %c0_i32, %c0_i32_0 : i32, i32
  }
  func.func @transform_6(%arg0: i32) -> (i32, i32) {
    %c0_i32 = arith.constant 0 : i32
    %c0_i32_0 = arith.constant 0 : i32
    %c0_i32_1 = arith.constant 0 : i32
    return %c0_i32, %c0_i32_0 : i32, i32
  }
  func.func @transform_7(%arg0: i32) -> (i32, i32, i32) {
    %c0_i32 = arith.constant 0 : i32
    %c0_i32_0 = arith.constant 0 : i32
    %c0_i32_1 = arith.constant 0 : i32
    return %arg0, %c0_i32, %c0_i32_0 : i32, i32, i32
  }
}

</mosaic_0001>

<bundles_post_ra>
// kernel: tpu_custom_call.1
= control target key start
LH: loop header
LB: loop body
LE: loop exit
PB: predicated region body
PF: predicated region fallthrough
CT: control target
= control target key end

     0   :  { %vm27_vm0 = vcmask 7168   ;;  %s668_s26 = smov 1   ;;  %v669_v1 = vmov 0.0   ;;  %vm30_vm1 = vcmask 146568   ;;  %vm33_vm2 = vcmask 154768   ;;  %s861_s0 = inlined_call_operand.vmem [shape: f32[1,8,32], index: 0, kind: input, shape index: {}]   ;;  %s862_s1 = inlined_call_operand.vmem [shape: f32[16,24], index: 1, kind: input, shape index: {}]   ;;  %s863_s2 = inlined_call_operand.vmem [shape: f32[16,1], index: 2, kind: input, shape index: {}]   ;;  %s864_s3 = inlined_call_operand.vmem [shape: f32[16,48], index: 3, kind: input, shape index: {}]   ;;  %s865_s4 = inlined_call_operand.vmem [shape: f32[16,1], index: 4, kind: input, shape index: {}]   ;;  %s866_s5 = inlined_call_operand.vmem [shape: f32[8,48], index: 5, kind: input, shape index: {}]   ;;  %s867_s6 = inlined_call_operand.vmem [shape: f32[8,1], index: 6, kind: input, shape index: {}]   ;;  %s868_s7 = inlined_call_operand.hbm [shape: f32[1,8,32], index: 7, kind: output, shape index: {}]  }
   0x1   :  { %v47_v0 = vld [vmem:[%s861_s0] sm:$0xff]  ;;  %28 = vst.msk [vmem:[#allocation2] sm:$0xff] %vm27_vm0, %v669_v1  ;;  %vm36_vm3 = vcmask 294168   ;;  %29 = vst.msk [vmem:[#allocation2 + $0x8] sm:$0xff] %vm27_vm0, %v669_v1 }
   0x2   :  { %49 = vrot.lane.b32.xlu0 %v47_v0, %s668_s26  ;;  %39 = vst.msk [vmem:[#allocation3] sm:$0xff] %vm27_vm0, %v669_v1  ;;  %40 = vst.msk [vmem:[#allocation3 + $0x8] sm:$0xff] %vm27_vm0, %v669_v1 }
   0x3   :  { %31 = vst.msk [vmem:[#allocation2] sm:$0xff] %vm30_vm1, %v669_v1  ;;  %32 = vst.msk [vmem:[#allocation2 + $0x8] sm:$0xff] %vm30_vm1, %v669_v1 }
   0x4   :  { %41 = vst.msk [vmem:[#allocation3] sm:$0xff] %vm30_vm1, %v669_v1  ;;  %42 = vst.msk [vmem:[#allocation3 + $0x8] sm:$0xff] %vm30_vm1, %v669_v1 }
   0x5   :  { %12 = vsyncpa [#allocation6], 0  ;;  %34 = vst.msk [vmem:[#allocation2] sm:$0xff] %vm33_vm2, %v669_v1  ;;  %s670_s0 = smov 3   ;;  %vm52_vm4 = vcmask 138248   ;;  %vm59_vm5 = vcmask 285848  }
   0x6   :  { %35 = vst.msk [vmem:[#allocation2 + $0x8] sm:$0xff] %vm33_vm2, %v669_v1  ;;  %43 = vst.msk [vmem:[#allocation3] sm:$0xff] %vm33_vm2, %v669_v1  ;;  %56 = vrot.lane.b32.xlu0 %v47_v0, %s670_s0  ;;  %vm62_vm6 = vcmask 130048   ;;  %s671_s27 = smov 126   ;;  %s672_s28 = smov 127   ;;  %v95_v5 = vld [vmem:[%s862_s1] sm:$0xff] }
   0x7   :  { %44 = vst.msk [vmem:[#allocation3 + $0x8] sm:$0xff] %vm33_vm2, %v669_v1  ;;  %s673_s29 = smov 124   ;;  %vm112_vm7 = vcmask 195584   ;;  %v97_v6 = vld [vmem:[%s863_s2] sm:$0xff]  ;;  %s674_s11 = smov 125   ;;  %v675_v7 = vmov 0  }
   0x8   :  { %37 = vst.msk [vmem:[#allocation2] sm:$0xff] %vm36_vm3, %v669_v1  ;;  %38 = vst.msk [vmem:[#allocation2 + $0x8] sm:$0xff] %vm36_vm3, %v669_v1  ;;  %601 = vmatprep.mubr.msk.f32.mxu0 %vm112_vm7, %v95_v5  ;;  %645 = vset.pattern.permute.xlu0 %v675_v7  ;;  %v98_v8 = vld [vmem:[%s863_s2 + $0x8] sm:$0xff]  ;;  %vm69_vm8 = vcmask 261248   ;;  %v280_v34 = vld [vmem:[%s864_s3] sm:$0xff]  ;;  %vm300_vm9 = vcmask 392192  }
   0x9   :  { %45 = vst.msk [vmem:[#allocation3] sm:$0xff] %vm36_vm3, %v669_v1  ;;  %46 = vst.msk [vmem:[#allocation3 + $0x8] sm:$0xff] %vm36_vm3, %v669_v1  ;;  %644 = vset.pattern.permute.xlu1 %v675_v7  ;;  %v96_v17 = vld [vmem:[%s862_s1 + $0x8] sm:$0xff]  ;;  %616 = vmatprep.mubr.msk.f32.mxu1 %vm300_vm9, %v280_v34  ;;  %v282_v36 = vld [vmem:[%s865_s4] sm:$0xff]  ;;  %vm676_vm10 = vmmov 0   ;;  %s677_s23 = smov [#allocation5]  }
   0xa   :  { %v283_v35 = vld [vmem:[%s865_s4 + $0x8] sm:$0xff]  ;;  %v469_v7 = vld [vmem:[%s867_s6] sm:$0xff]  ;;  %s562_s24 = sshll.u32 %s677_s23, 4  ;;  %vm554_vm11 = vcmask 261120   ;;  %s563_s24 = int_to_ptr.vmem [resolvable:$true] %s562_s24 }
   0xb   :  { %v281_v53 = vld [vmem:[%s864_s3 + $0x8] sm:$0xff]  ;;  %s646_s25 = scalar_lea.vmem %s563_s24, 128  ;;  %p651_p1 = scmp.lt.s32.totalorder %s563_s24, %s563_s24 }
   0xc   :  { %p647_p0 = scmp.ne.s32.totalorder %s563_s24, %s646_s25  ;;  %p652_p2 = scmp.lt.s32.totalorder %s646_s25, %s646_s25 }
   0xe   :  { %p653_p3 = por %p652_p2, %p651_p1 }
  0x10   :  { %p654_p4 = pnand %p653_p3, %p647_p0 }
  0x74   :  { %v50_v2 = vpop.permute.xlu0 %49 }
  0x75   :  { %53 = vst.msk [vmem:[#allocation2] sm:$0xff] %vm52_vm4, %v50_v2 }
  0x78   :  { %v57_v3 = vpop.permute.xlu0 %56 }
  0x79   :  { %60 = vst.msk [vmem:[#allocation2] sm:$0xff] %vm59_vm5, %v57_v3 }
  0x80   :  { %v83_v4 = vld [vmem:[#allocation2] sm:$0xff] }
  0x81   :  { %85 = vrot.lane.b32.xlu1 %v83_v4, %s671_s27  ;;  %73 = vrot.lane.b32.xlu0 %v83_v4, %s672_s28  ;;  %63 = vst.msk [vmem:[#allocation4] sm:$0xff] %vm62_vm6, %v83_v4 }
  0x85   :  { %91 = vrot.lane.b32.xlu1 %v83_v4, %s673_s29  ;;  %66 = vrot.lane.b32.xlu0 %v83_v4, %s671_s27 }
  0x89   :  { %79 = vrot.lane.b32.xlu1 %v83_v4, %s674_s11  ;;  %104 = vperm.xlu0 %645, %v97_v6  }
  0x8d   :  { %109 = vperm.xlu1 %644, %v98_v8  }
  0xf3   :  { %v86_v9 = vpop.permute.xlu1 %85  ;;  %v74_v10 = vpop.permute.xlu0 %73 }
  0xf4   :  { %88 = vst.msk [vmem:[#allocation4 + $0x10] sm:$0xff] %vm62_vm6, %v86_v9  ;;  %76 = vst.msk [vmem:[#allocation4 + $0x8] sm:$0xff] %vm62_vm6, %v74_v10 }
  0xf7   :  { %v92_v11 = vpop.permute.xlu1 %91  ;;  %v67_v12 = vpop.permute.xlu0 %66 }
  0xf8   :  { %94 = vst.msk [vmem:[#allocation4 + $0x10] sm:$0xff] %vm69_vm8, %v92_v11  ;;  %70 = vst.msk [vmem:[#allocation4] sm:$0xff] %vm69_vm8, %v67_v12 }
  0xfb   :  { %v80_v13 = vpop.permute.xlu1 %79 }
  0xfc   :  { %82 = vst.msk [vmem:[#allocation4 + $0x8] sm:$0xff] %vm69_vm8, %v80_v13 }
  0xff   :  { %v101_v14 = vld [vmem:[#allocation4 + $0x10] sm:$0xff]  ;;  %v99_v16 = vld [vmem:[#allocation4] sm:$0xff] }
 0x100   :  { %595 = vmatprep.subr.mxu0 %v101_v14 }
 0x101   :  { %596 = vmatpush3.msra.mxu0 %v101_v14 }
 0x103   :  { %v100_v15 = vld [vmem:[#allocation4 + $0x8] sm:$0xff] }
 0x104   :  { %597 = vmatprep.subr.mxu0 %v100_v15  ;;  %v105_v20 = vpop.permute.xlu0 %104 }
 0x105   :  { %598 = vmatpush3.msra.mxu0 %v100_v15 }
 0x106   :  { %599 = vmatprep.subr.mxu0 %v99_v16 }
 0x107   :  { %600 = vmatpush3.msra.mxu0 %v99_v16 }
 0x108   :  { %602 = vmatmul.mubr.msk.f32.vlgmr.msra.gmra.mxu0 %vm112_vm7, %v96_v17  ;;  %619 = vmatprep.subr.mxu0 %v669_v1  ;;  %v110_v18 = vpop.permute.xlu1 %109 }
 0x109   :  { %631 = vmatprep.mubr.msk.f32.mxu0 %vm676_vm10, %v669_v1 }
 0x1c8   :  { %v603_v19 = vpop.f32.mrf.mxu0 }
 0x1c9   :  { %v191_v21 = vadd.f32 %v603_v19, %v110_v18 }
 0x1ca   :  { %v185_v22 = vpop.f32.mrf.mxu0 }
 0x1cb   :  { %v195_v23 = vmul.f32 0.2, %v191_v21  ;;  %v186_v24 = vadd.f32 %v185_v22, %v105_v20 }
 0x1cd   :  { %v197_v25 = vmax.f32 %v191_v21, %v195_v23  ;;  %v194_v26 = vmul.f32 0.2, %v186_v24  ;;  %v468_v23 = vld [vmem:[%s866_s5] sm:$0xff] }
 0x1cf   :  { %v196_v27 = vmax.f32 %v186_v24, %v194_v26  ;;  %202 = vrot.lane.b32.xlu1 %v197_v25, %s668_s26 }
 0x1d1   :  { %200 = vrot.lane.b32.xlu0 %v196_v27, %s668_s26 }
 0x1d3   :  { %210 = vrot.lane.b32.xlu1 %v197_v25, %s670_s0 }
 0x1d7   :  { %208 = vrot.lane.b32.xlu1 %v196_v27, %s670_s0 }
 0x241   :  { %v203_v28 = vpop.permute.xlu1 %202 }
 0x242   :  { %207 = vst.msk [vmem:[#allocation3 + $0x8] sm:$0xff] %vm52_vm4, %v203_v28 }
 0x243   :  { %v201_v29 = vpop.permute.xlu0 %200 }
 0x244   :  { %206 = vst.msk [vmem:[#allocation3] sm:$0xff] %vm52_vm4, %v201_v29 }
 0x245   :  { %v211_v30 = vpop.permute.xlu1 %210 }
 0x246   :  { %215 = vst.msk [vmem:[#allocation3 + $0x8] sm:$0xff] %vm59_vm5, %v211_v30 }
 0x249   :  { %v209_v31 = vpop.permute.xlu1 %208 }
 0x24a   :  { %214 = vst.msk [vmem:[#allocation3] sm:$0xff] %vm59_vm5, %v209_v31 }
 0x24d   :  { %v269_v32 = vld [vmem:[#allocation3 + $0x8] sm:$0xff] }
 0x24e   :  { %274 = vrot.lane.b32.xlu1 %v269_v32, %s673_s29  ;;  %262 = vrot.lane.b32.xlu0 %v269_v32, %s671_s27  ;;  %219 = vst.msk [vmem:[#allocation4 + $0x8] sm:$0xff] %vm62_vm6, %v269_v32 }
 0x251   :  { %v268_v33 = vld [vmem:[#allocation3] sm:$0xff] }
 0x252   :  { %250 = vrot.lane.b32.xlu1 %v269_v32, %s674_s11  ;;  %238 = vrot.lane.b32.xlu0 %v269_v32, %s672_s28  ;;  %218 = vst.msk [vmem:[#allocation4] sm:$0xff] %vm62_vm6, %v268_v33 }
 0x256   :  { %272 = vrot.lane.b32.xlu1 %v268_v33, %s673_s29  ;;  %260 = vrot.lane.b32.xlu0 %v268_v33, %s671_s27 }
 0x25a   :  { %248 = vrot.lane.b32.xlu1 %v268_v33, %s674_s11  ;;  %236 = vrot.lane.b32.xlu0 %v268_v33, %s672_s28 }
 0x25e   :  { %226 = vrot.lane.b32.xlu0 %v269_v32, %s671_s27  ;;  %224 = vrot.lane.b32.xlu1 %v268_v33, %s671_s27 }
 0x262   :  { %297 = vperm.xlu0 %645, %v283_v35   ;;  %292 = vperm.xlu1 %644, %v282_v36  }
 0x2c0   :  { %v275_v37 = vpop.permute.xlu1 %274  ;;  %v263_v38 = vpop.permute.xlu0 %262 }
 0x2c1   :  { %267 = vst.msk [vmem:[#allocation4 + $0x28] sm:$0xff] %vm62_vm6, %v263_v38 }
 0x2c2   :  { %279 = vst.msk [vmem:[#allocation4 + $0x28] sm:$0xff] %vm69_vm8, %v275_v37 }
 0x2c4   :  { %v251_v39 = vpop.permute.xlu1 %250  ;;  %v239_v40 = vpop.permute.xlu0 %238 }
 0x2c5   :  { %243 = vst.msk [vmem:[#allocation4 + $0x18] sm:$0xff] %vm62_vm6, %v239_v40 }
 0x2c6   :  { %255 = vst.msk [vmem:[#allocation4 + $0x18] sm:$0xff] %vm69_vm8, %v251_v39 }
 0x2c8   :  { %v273_v41 = vpop.permute.xlu1 %272  ;;  %v261_v42 = vpop.permute.xlu0 %260 }
 0x2c9   :  { %266 = vst.msk [vmem:[#allocation4 + $0x20] sm:$0xff] %vm62_vm6, %v261_v42  ;;  %v289_v43 = vld [vmem:[#allocation4 + $0x28] sm:$0xff] }
 0x2ca   :  { %278 = vst.msk [vmem:[#allocation4 + $0x20] sm:$0xff] %vm69_vm8, %v273_v41  ;;  %604 = vmatprep.subr.mxu1 %v289_v43 }
 0x2cb   :  { %605 = vmatpush3.msra.mxu1 %v289_v43 }
 0x2cc   :  { %v249_v44 = vpop.permute.xlu1 %248  ;;  %v237_v45 = vpop.permute.xlu0 %236 }
 0x2cd   :  { %242 = vst.msk [vmem:[#allocation4 + $0x10] sm:$0xff] %vm62_vm6, %v237_v45  ;;  %v287_v49 = vld [vmem:[#allocation4 + $0x18] sm:$0xff] }
 0x2ce   :  { %254 = vst.msk [vmem:[#allocation4 + $0x10] sm:$0xff] %vm69_vm8, %v249_v44 }
 0x2d0   :  { %v225_v46 = vpop.permute.xlu1 %224  ;;  %v227_v47 = vpop.permute.xlu0 %226 }
 0x2d1   :  { %230 = vst.msk [vmem:[#allocation4] sm:$0xff] %vm69_vm8, %v225_v46  ;;  %231 = vst.msk [vmem:[#allocation4 + $0x8] sm:$0xff] %vm69_vm8, %v227_v47  ;;  %v288_v48 = vld [vmem:[#allocation4 + $0x20] sm:$0xff] }
 0x2d2   :  { %606 = vmatprep.subr.mxu1 %v288_v48 }
 0x2d3   :  { %607 = vmatpush3.msra.mxu1 %v288_v48 }
 0x2d4   :  { %608 = vmatprep.subr.mxu1 %v287_v49 }
 0x2d5   :  { %609 = vmatpush3.msra.mxu1 %v287_v49  ;;  %v286_v50 = vld [vmem:[#allocation4 + $0x10] sm:$0xff] }
 0x2d6   :  { %610 = vmatprep.subr.mxu1 %v286_v50 }
 0x2d7   :  { %611 = vmatpush3.msra.mxu1 %v286_v50 }
 0x2d8   :  { %v285_v51 = vld [vmem:[#allocation4 + $0x8] sm:$0xff]  ;;  %v284_v52 = vld [vmem:[#allocation4] sm:$0xff] }
 0x2d9   :  { %612 = vmatprep.subr.mxu1 %v285_v51 }
 0x2da   :  { %613 = vmatpush3.msra.mxu1 %v285_v51 }
 0x2db   :  { %614 = vmatprep.subr.mxu1 %v284_v52 }
 0x2dc   :  { %615 = vmatpush3.msra.mxu1 %v284_v52 }
 0x2dd   :  { %617 = vmatmul.mubr.msk.f32.vlgmr.msra.gmra.mxu1 %vm300_vm9, %v281_v53  ;;  %v298_v54 = vpop.permute.xlu0 %297  ;;  %v293_v57 = vpop.permute.xlu1 %292 }
 0x39d   :  { %v618_v55 = vpop.f32.mrf.mxu1 }
 0x39e   :  { %v379_v56 = vadd.f32 %v618_v55, %v298_v54 }
 0x39f   :  { %v373_v58 = vpop.f32.mrf.mxu1 }
 0x3a0   :  { %v383_v59 = vmul.f32 0.2, %v379_v56  ;;  %v374_v60 = vadd.f32 %v373_v58, %v293_v57 }
 0x3a2   :  { %v385_v61 = vmax.f32 %v379_v56, %v383_v59  ;;  %v382_v62 = vmul.f32 0.2, %v374_v60 }
 0x3a4   :  { %398 = vrot.lane.b32.xlu1 %v385_v61, %s670_s0  ;;  %390 = vrot.lane.b32.xlu0 %v385_v61, %s668_s26  ;;  %v384_v63 = vmax.f32 %v374_v60, %v382_v62 }
 0x3a8   :  { %396 = vrot.lane.b32.xlu1 %v384_v63, %s670_s0  ;;  %388 = vrot.lane.b32.xlu0 %v384_v63, %s668_s26 }
 0x416   :  { %v399_v0 = vpop.permute.xlu1 %398  ;;  %v391_v2 = vpop.permute.xlu0 %390 }
 0x417   :  { %395 = vst.msk [vmem:[#allocation2 + $0x8] sm:$0xff] %vm52_vm4, %v391_v2 }
 0x418   :  { %403 = vst.msk [vmem:[#allocation2 + $0x8] sm:$0xff] %vm59_vm5, %v399_v0 }
 0x41a   :  { %v397_v3 = vpop.permute.xlu1 %396  ;;  %v389_v4 = vpop.permute.xlu0 %388 }
 0x41b   :  { %394 = vst.msk [vmem:[#allocation2] sm:$0xff] %vm52_vm4, %v389_v4 }
 0x41c   :  { %402 = vst.msk [vmem:[#allocation2] sm:$0xff] %vm59_vm5, %v397_v3 }
 0x41f   :  { %v457_v5 = vld [vmem:[#allocation2 + $0x8] sm:$0xff] }
 0x420   :  { %462 = vrot.lane.b32.xlu1 %v457_v5, %s673_s29  ;;  %450 = vrot.lane.b32.xlu0 %v457_v5, %s671_s27  ;;  %407 = vst.msk [vmem:[#allocation4 + $0x8] sm:$0xff] %vm62_vm6, %v457_v5 }
 0x423   :  { %v456_v6 = vld [vmem:[#allocation2] sm:$0xff] }
 0x424   :  { %438 = vrot.lane.b32.xlu1 %v457_v5, %s674_s11  ;;  %426 = vrot.lane.b32.xlu0 %v457_v5, %s672_s28  ;;  %406 = vst.msk [vmem:[#allocation4] sm:$0xff] %vm62_vm6, %v456_v6 }
 0x428   :  { %460 = vrot.lane.b32.xlu1 %v456_v6, %s673_s29  ;;  %448 = vrot.lane.b32.xlu0 %v456_v6, %s671_s27 }
 0x42c   :  { %436 = vrot.lane.b32.xlu1 %v456_v6, %s674_s11  ;;  %424 = vrot.lane.b32.xlu0 %v456_v6, %s672_s28 }
 0x430   :  { %414 = vrot.lane.b32.xlu0 %v457_v5, %s671_s27  ;;  %412 = vrot.lane.b32.xlu1 %v456_v6, %s671_s27 }
 0x434   :  { %478 = vperm.xlu0 %645, %v469_v7  }
 0x492   :  { %v463_v8 = vpop.permute.xlu1 %462  ;;  %v451_v9 = vpop.permute.xlu0 %450 }
 0x493   :  { %455 = vst.msk [vmem:[#allocation4 + $0x28] sm:$0xff] %vm62_vm6, %v451_v9 }
 0x494   :  { %467 = vst.msk [vmem:[#allocation4 + $0x28] sm:$0xff] %vm69_vm8, %v463_v8 }
 0x496   :  { %v439_v10 = vpop.permute.xlu1 %438  ;;  %v427_v11 = vpop.permute.xlu0 %426 }
 0x497   :  { %431 = vst.msk [vmem:[#allocation4 + $0x18] sm:$0xff] %vm62_vm6, %v427_v11 }
 0x498   :  { %443 = vst.msk [vmem:[#allocation4 + $0x18] sm:$0xff] %vm69_vm8, %v439_v10 }
 0x49a   :  { %v461_v12 = vpop.permute.xlu1 %460  ;;  %v449_v13 = vpop.permute.xlu0 %448 }
 0x49b   :  { %454 = vst.msk [vmem:[#allocation4 + $0x20] sm:$0xff] %vm62_vm6, %v449_v13  ;;  %v475_v14 = vld [vmem:[#allocation4 + $0x28] sm:$0xff] }
 0x49c   :  { %466 = vst.msk [vmem:[#allocation4 + $0x20] sm:$0xff] %vm69_vm8, %v461_v12  ;;  %620 = vmatpush3.msra.mxu0 %v475_v14 }
 0x49d   :  { %621 = vmatprep.subr.mxu0 %v669_v1 }
 0x49e   :  { %v437_v15 = vpop.permute.xlu1 %436  ;;  %v425_v16 = vpop.permute.xlu0 %424 }
 0x49f   :  { %430 = vst.msk [vmem:[#allocation4 + $0x10] sm:$0xff] %vm62_vm6, %v425_v16  ;;  %v473_v20 = vld [vmem:[#allocation4 + $0x18] sm:$0xff] }
 0x4a0   :  { %442 = vst.msk [vmem:[#allocation4 + $0x10] sm:$0xff] %vm69_vm8, %v437_v15 }
 0x4a2   :  { %v413_v17 = vpop.permute.xlu1 %412  ;;  %v415_v18 = vpop.permute.xlu0 %414 }
 0x4a3   :  { %418 = vst.msk [vmem:[#allocation4] sm:$0xff] %vm69_vm8, %v413_v17  ;;  %419 = vst.msk [vmem:[#allocation4 + $0x8] sm:$0xff] %vm69_vm8, %v415_v18  ;;  %v474_v19 = vld [vmem:[#allocation4 + $0x20] sm:$0xff] }
 0x4a4   :  { %622 = vmatpush3.msra.mxu0 %v474_v19 }
 0x4a5   :  { %623 = vmatprep.subr.mxu0 %v669_v1 }
 0x4a6   :  { %624 = vmatpush3.msra.mxu0 %v473_v20 }
 0x4a7   :  { %625 = vmatprep.subr.mxu0 %v669_v1  ;;  %v472_v21 = vld [vmem:[#allocation4 + $0x10] sm:$0xff] }
 0x4a8   :  { %626 = vmatpush3.msra.mxu0 %v472_v21 }
 0x4a9   :  { %627 = vmatprep.subr.mxu0 %v669_v1 }
 0x4aa   :  { %v471_v22 = vld [vmem:[#allocation4 + $0x8] sm:$0xff]  ;;  %v470_v24 = vld [vmem:[#allocation4] sm:$0xff] }
 0x4ab   :  { %628 = vmatpush3.msra.mxu0 %v471_v22 }
 0x4ac   :  { %629 = vmatprep.subr.mxu0 %v669_v1 }
 0x4ad   :  { %630 = vmatpush3.msra.mxu0 %v470_v24 }
 0x4ae   :  { %632 = vmatmul.mubr.msk.f32.vlgmr.msra.gmra.mxu0 %vm300_vm9, %v468_v23 }
 0x4af   :  { %v479_v25 = vpop.permute.xlu0 %478 }
 0x56e   :  { %v550_v26 = vpop.f32.mrf.mxu0 }
 0x56f   :  { %v551_v27 = vadd.f32 %v550_v26, %v479_v25 }
 0x570   :  { %v633_v28 = vpop.f32.mrf.mxu0 }
 0x571   :  { %555 = vst.msk [vmem:[#allocation5] sm:$0xff] %vm554_vm11, %v551_v27 }
 0x572   :  { %657 = shalt.err (!%p654_p4)
}
 0x573   :  { %565 = dma.vmem_to_hbm [thread:$0]  %s563_s24, 128, %s868_s7, [#allocation6]  }
 0x574   :  { %666 = dma.done.wait [#allocation6], 128  }
 0x575   :  { %667 = vsyncadd [#allocation6], 4294967168 }
 0x576   :  { %569 = vsyncpa [#allocation6], 1 }

</bundles_post_ra>
